<compile_context>
chip_gen: v6e
topology: v6e:2x2x1
jax: 0.10.0
libtpu: 0.0.40
codegen_flags: <defaults>
</compile_context>

<pallas_src>
import math

import jax
import jax.numpy as jnp
from jax.experimental import pallas as pl
from jax.experimental.pallas import tpu as pltpu


def _round_up(n, m):
    return ((n + m - 1) // m) * m


def _cdiv(a, b):
    return -(-a // b)


def _make_kernel(ml, n_l_blocks, nb):
    """ml: avg-pool window; n_l_blocks: grid extent along L; nb: pool windows per block."""

    def kernel(x_ref, wc_ref, wl_ref, bo_ref, o_ref, acc_ref):
        # x_ref : (bt, TL, D)        native-layout input block (bt batch rows, TL steps)
        # wc_ref: (D, D)             conv weight^T (in, out), resident
        # wl_ref: (n_pool, Cp)       linear weight^T scaled by 1/max_len, fully resident
        # bo_ref: (1, Cp)            f32 fused bias (lin_b + pooled conv-bias @ lin_w^T)
        # o_ref : (bt, Cp)           output tile (written once, at the last L-block)
        # acc_ref: (bt, Cp)          f32 accumulator scratch
        lb = pl.program_id(1)

        @pl.when(lb == 0)
        def _init():
            acc_ref[...] = jnp.zeros_like(acc_ref)

        bt, tl, d = x_ref.shape
        x = x_ref[...].reshape(bt * tl, d)
        # Conv1d(kernel_size=1) == pointwise linear; bias folded into the output bias.
        y = jnp.dot(x, wc_ref[...], preferred_element_type=jnp.float32)   # (bt*tl, d) f32

        # In-kernel AvgPool1d over the flattened (L*D) axis: each L-block covers whole
        # pool windows, so pooling is a plain reshape + sum (1/max_len folded into wl).
        if d % ml == 0:
            # Windows never cross timesteps -> reduce BEFORE flattening (ml x less relayout).
            pooled = y.reshape(bt * tl, d // ml, ml).sum(axis=-1).reshape(bt, nb)
        else:
            # General path: flatten (t, d) per batch row, drop any pooled-away tail.
            pooled = y.reshape(bt, tl * d)[:, : nb * ml].reshape(bt, nb, ml).sum(axis=-1)

        # Row-slice of the (1/max_len)-scaled Linear weight for this block's windows.
        if n_l_blocks > 1:
            w = wl_ref[pl.ds(pl.multiple_of(lb * nb, 8), nb), :]   # nb % 8 == 0 by construction
        else:
            w = wl_ref[...]
        acc_ref[...] += jnp.dot(pooled.astype(w.dtype), w,
                                preferred_element_type=jnp.float32)

        @pl.when(lb == n_l_blocks - 1)
        def _finalize():
            # Dropout: eval-mode identity.
            o_ref[...] = (acc_ref[...] + bo_ref[...]).astype(o_ref.dtype)

    return kernel


def predict_head_all(x, conv_w, conv_b, lin_w, lin_b, max_len, *, batch_tile=256):
    """x: (bs, L, d_model); conv_w: (d_model, d_model) [out,in]; conv_b: (d_model,)
    lin_w: (num_class, n_pool) [out,in]; lin_b: (num_class,).  Returns (bs, num_class)."""
    bs, L, D = x.shape
    C = lin_w.shape[0]
    ml = int(max_len)
    n_pool = (L * D) // ml
    # PyTorch shape constraint: Linear in_features must equal the pooled width.
    assert lin_w.shape[1] == n_pool, "Linear in_features must equal (L*d_model)//max_len"

    itemsize = jnp.dtype(x.dtype).itemsize
    sub = {4: 8, 2: 16, 1: 32}.get(itemsize, 8)          # dtype-aware sublane rounding
    c_pad = _round_up(C, 128)                             # lane-dense output

    # ---- timestep block TL: several steps per grid iteration (amortize ~600cyc/step).
    # Need: TL | L, ml | TL*D (block covers whole pool windows), 8 | (TL*D)//ml (aligned
    # wl row-slices), and TL % 8 == 0 (BlockSpec second-minor rule).  Fallback: TL = L.
    tl = L
    for cand in range(8, L, 8):
        if L % cand == 0 and (cand * D) % ml == 0 and ((cand * D) // ml) % 8 == 0:
            tl = cand
            break
    n_l_blocks = L // tl
    nb = (tl * D) // ml if n_l_blocks > 1 else n_pool     # pool windows per L-block

    # ---- batch tile: minimize padding, dtype-aware rounding, >=2 parallel blocks (v7x).
    if bs <= sub:
        bt = bs                                           # full-dim block (exempt from 8-row rule)
    else:
        tiles = max(2, _cdiv(bs, batch_tile))
        bt = min(_round_up(_cdiv(bs, tiles), sub), _round_up(bs, sub))
    # Keep the double-buffered x block within a conservative VMEM budget (v7x: 64 MiB).
    budget = 24 << 20
    while bt > sub and 2 * bt * tl * D * itemsize > budget:
        bt = max(sub, _round_up(bt // 2, sub))
    n_b_tiles = _cdiv(bs, bt)

    # ---- parameters in matmul-friendly layout (no L-scaled weights anywhere).
    wc_t = conv_w.T                                                   # (D_in, D_out)
    wl = (lin_w.T / ml).astype(lin_w.dtype)                           # (n_pool, C), pool scale folded
    wl = jnp.pad(wl, ((0, 0), (0, c_pad - C)))                        # (n_pool, Cp)
    # Conv bias contributes a batch-independent constant to the pooled vector -> fold it
    # (and lin_b) into one f32 output bias; removes the per-step (bt, D) broadcast-add.
    bc_flat = jnp.tile(conv_b.astype(jnp.float32), L)                 # (L*D,), flattened (t, d) order
    bc_pool = bc_flat[: n_pool * ml].reshape(n_pool, ml).mean(-1)     # (n_pool,)
    bo = lin_b.astype(jnp.float32) + bc_pool @ lin_w.T.astype(jnp.float32)
    bo = jnp.pad(bo.reshape(1, C), ((0, 0), (0, c_pad - C)))          # (1, Cp) f32

    # ---- VMEM sizing / cost hint.
    wl_bytes = wl.size * wl.dtype.itemsize
    vmem_need = (2 * bt * tl * D * itemsize                            # double-buffered x block
                 + 2 * (D * D * conv_w.dtype.itemsize + wl_bytes + c_pad * 4)
                 + bt * c_pad * 4                                      # f32 accumulator
                 + 2 * bt * c_pad * itemsize)                          # output block
    vmem_limit = int(max(16 << 20, min(48 << 20, 2 * vmem_need), vmem_need + (8 << 20)))

    flops = 2 * bs * L * D * D + 2 * bs * n_pool * c_pad
    bytes_accessed = int(x.size * itemsize
                         + n_b_tiles * (D * D * conv_w.dtype.itemsize + wl_bytes
                                        + bo.size * 4)
                         + bs * c_pad * itemsize)

    kernel = _make_kernel(ml, n_l_blocks, nb)

    out_pad = pl.pallas_call(
        kernel,
        out_shape=jax.ShapeDtypeStruct((bs, c_pad), x.dtype),
        grid_spec=pltpu.PrefetchScalarGridSpec(
            num_scalar_prefetch=0,
            grid=(n_b_tiles, n_l_blocks),
            in_specs=[
                pl.BlockSpec((bt, tl, D), lambda b, l: (b, l, 0)),     # x, native (bs, L, D) layout
                pl.BlockSpec((D, D), lambda b, l: (0, 0)),             # conv weight^T (resident)
                pl.BlockSpec((n_pool, c_pad), lambda b, l: (0, 0)),    # scaled linear weight (resident)
                pl.BlockSpec((1, c_pad), lambda b, l: (0, 0)),         # fused f32 bias
            ],
            out_specs=pl.BlockSpec((bt, c_pad), lambda b, l: (b, 0)),
            scratch_shapes=[pltpu.VMEM((bt, c_pad), jnp.float32)],
        ),
        compiler_params=pltpu.CompilerParams(
            dimension_semantics=("parallel", "arbitrary"),
            vmem_limit_bytes=vmem_limit),
        cost_estimate=pl.CostEstimate(
            flops=flops, transcendentals=0, bytes_accessed=bytes_accessed),
    )(x, wc_t, wl, bo)

    return out_pad[:, :C]


def _init_params(key, d_model, num_class, dtype=jnp.float32):
    # Mirrors nn.Conv1d / nn.Linear default uniform(-1/sqrt(fan_in), 1/sqrt(fan_in)).
    k1, k2, k3, k4 = jax.random.split(key, 4)
    lim = 1.0 / math.sqrt(d_model)
    conv_w = jax.random.uniform(k1, (d_model, d_model), dtype, -lim, lim)   # [out, in]
    conv_b = jax.random.uniform(k2, (d_model,), dtype, -lim, lim)
    lin_w = jax.random.uniform(k3, (num_class, d_model), dtype, -lim, lim)  # [out, in]
    lin_b = jax.random.uniform(k4, (num_class,), dtype, -lim, lim)
    return conv_w, conv_b, lin_w, lin_b


if __name__ == "__main__":
    key = jax.random.PRNGKey(0)
    bs, max_len, d_model, num_class = 2, 8, 32, 5
    L = max_len  # sequence length equals max_len (required by the module's shapes)

    kx, kp = jax.random.split(key)
    x = jax.random.normal(kx, (bs, L, d_model), jnp.float32)
    conv_w, conv_b, lin_w, lin_b = _init_params(kp, d_model, num_class)

    out = predict_head_all(x, conv_w, conv_b, lin_w, lin_b, max_len)
    out = jax.block_until_ready(out)

    # Pure-JAX reference following the literal PyTorch op order.
    y_ref = jnp.einsum("bld,od->blo", x, conv_w) + conv_b          # Conv1d k=1
    y_flat = y_ref.reshape(bs, -1)                                 # (bs, L*D)
    n_pool = (L * d_model) // max_len
    z_ref = y_flat[:, : n_pool * max_len].reshape(bs, n_pool, max_len).mean(-1)
    ref = z_ref @ lin_w.T + lin_b                                  # (bs, num_class)

    assert out.shape == (bs, num_class)
    assert jnp.allclose(out, ref, atol=1e-4, rtol=1e-4), float(jnp.abs(out - ref).max())

    print("KERNEL_OK")
</pallas_src>

<mosaic_0001>
module attributes {stable_mosaic.version = 11 : i64} {
  func.func @kernel(%arg0: i32, %arg1: i32, %arg2: memref<2x8x32xf32, #tpu.memory_space<vmem>>, %arg3: memref<32x32xf32, #tpu.memory_space<vmem>>, %arg4: memref<32x128xf32, #tpu.memory_space<vmem>>, %arg5: memref<1x128xf32, #tpu.memory_space<vmem>>, %arg6: memref<2x128xf32, #tpu.memory_space<vmem>>, %arg7: memref<2x128xf32, #tpu.memory_space<vmem>>) attributes {dimension_semantics = [#tpu.dimension_semantics<parallel>, #tpu.dimension_semantics<arbitrary>], iteration_bounds = array<i64: 1, 1>, scalar_prefetch = 0 : i64, scratch_operands = 1 : i64, tpu.core_type = #tpu.core_type<tc>, window_params = [{transform_indices = @transform_0, window_bounds = array<i64: 2, 8, 32>}, {pipeline_mode = #tpu.pipeline_mode<synchronous>, transform_indices = @transform_1, window_bounds = array<i64: 32, 32>}, {pipeline_mode = #tpu.pipeline_mode<synchronous>, transform_indices = @transform_2, window_bounds = array<i64: 32, 128>}, {pipeline_mode = #tpu.pipeline_mode<synchronous>, transform_indices = @transform_3, window_bounds = array<i64: 1, 128>}, {transform_indices = @transform_4, window_bounds = array<i64: 2, 128>}]} {
    %c0_i32 = arith.constant 0 : i32
    %0 = arith.cmpi eq, %arg1, %c0_i32 : i32
    %1 = arith.extui %0 : i1 to i32
    %c0_i32_0 = arith.constant 0 : i32
    %2 = arith.cmpi ne, %1, %c0_i32_0 : i32
    scf.if %2 {
      %cst_15 = arith.constant 0.000000e+00 : f32
      %18 = vector.broadcast %cst_15 : f32 to vector<2x128xf32>
      %c0_16 = arith.constant 0 : index
      %c0_17 = arith.constant 0 : index
      %19 = vector.load %arg7[%c0_16, %c0_17] : memref<2x128xf32, #tpu.memory_space<vmem>>, vector<2x128xf32>
      tpu.vector_store %arg7[%c0_16, %c0_17], %18 {strides = array<i32>} : memref<2x128xf32, #tpu.memory_space<vmem>>, vector<2x128xf32>,
    } else {
    }
    %c0 = arith.constant 0 : index
    %c0_1 = arith.constant 0 : index
    %c0_2 = arith.constant 0 : index
    %3 = vector.load %arg2[%c0, %c0_1, %c0_2] : memref<2x8x32xf32, #tpu.memory_space<vmem>>, vector<2x8x32xf32>
    %4 = vector.shape_cast %3 : vector<2x8x32xf32> to vector<16x32xf32>
    %c0_3 = arith.constant 0 : index
    %c0_4 = arith.constant 0 : index
    %5 = vector.load %arg3[%c0_3, %c0_4] : memref<32x32xf32, #tpu.memory_space<vmem>>, vector<32x32xf32>
    %cst = arith.constant dense<0.000000e+00> : vector<16x32xf32>
    %6 = tpu.matmul %4, %5, %cst {dimension_numbers = #tpu.dot_dimension_numbers<[1], [0], [0], [1], [0, 0, 1, 1], [], []>} : vector<16x32xf32>, vector<32x32xf32>, vector<16x32xf32> -> vector<16x32xf32>
    %7 = vector.shape_cast %6 : vector<16x32xf32> to vector<16x4x8xf32>
    %cst_5 = arith.constant dense<0.000000e+00> : vector<16x4xf32>
    %8 = vector.multi_reduction <add>, %7, %cst_5 [2] : vector<16x4x8xf32> to vector<16x4xf32>
    %9 = vector.shape_cast %8 : vector<16x4xf32> to vector<2x32xf32>
    %c0_6 = arith.constant 0 : index
    %c0_7 = arith.constant 0 : index
    %10 = vector.load %arg4[%c0_6, %c0_7] : memref<32x128xf32, #tpu.memory_space<vmem>>, vector<32x128xf32>
    %c0_8 = arith.constant 0 : index
    %c0_9 = arith.constant 0 : index
    %11 = vector.load %arg7[%c0_8, %c0_9] : memref<2x128xf32, #tpu.memory_space<vmem>>, vector<2x128xf32>
    %cst_10 = arith.constant dense<0.000000e+00> : vector<2x128xf32>
    %12 = tpu.matmul %9, %10, %cst_10 {dimension_numbers = #tpu.dot_dimension_numbers<[1], [0], [0], [1], [0, 0, 1, 1], [], []>} : vector<2x32xf32>, vector<32x128xf32>, vector<2x128xf32> -> vector<2x128xf32>
    %13 = arith.addf %11, %12 : vector<2x128xf32>
    %c0_11 = arith.constant 0 : index
    %c0_12 = arith.constant 0 : index
    %14 = vector.load %arg7[%c0_11, %c0_12] : memref<2x128xf32, #tpu.memory_space<vmem>>, vector<2x128xf32>
    tpu.vector_store %arg7[%c0_11, %c0_12], %13 {strides = array<i32>} : memref<2x128xf32, #tpu.memory_space<vmem>>, vector<2x128xf32>,
    %c0_i32_13 = arith.constant 0 : i32
    %15 = arith.cmpi eq, %arg1, %c0_i32_13 : i32
    %16 = arith.extui %15 : i1 to i32
    %c0_i32_14 = arith.constant 0 : i32
    %17 = arith.cmpi ne, %16, %c0_i32_14 : i32
    scf.if %17 {
      %c0_15 = arith.constant 0 : index
      %c0_16 = arith.constant 0 : index
      %18 = vector.load %arg7[%c0_15, %c0_16] : memref<2x128xf32, #tpu.memory_space<vmem>>, vector<2x128xf32>
      %c0_17 = arith.constant 0 : index
      %c0_18 = arith.constant 0 : index
      %19 = vector.load %arg5[%c0_17, %c0_18] : memref<1x128xf32, #tpu.memory_space<vmem>>, vector<1x128xf32>
      %20 = vector.broadcast %19 : vector<1x128xf32> to vector<2x128xf32>
      %21 = arith.addf %18, %20 : vector<2x128xf32>
      %c0_19 = arith.constant 0 : index
      %c0_20 = arith.constant 0 : index
      %22 = vector.load %arg6[%c0_19, %c0_20] : memref<2x128xf32, #tpu.memory_space<vmem>>, vector<2x128xf32>
      tpu.vector_store %arg6[%c0_19, %c0_20], %21 {strides = array<i32>} : memref<2x128xf32, #tpu.memory_space<vmem>>, vector<2x128xf32>,
    } else {
    }
    return
  }
  func.func @transform_0(%arg0: i32, %arg1: i32) -> (i32, i32, i32) {
    %c0_i32 = arith.constant 0 : i32
    %c0_i32_0 = arith.constant 0 : i32
    return %arg0, %arg1, %c0_i32 : i32, i32, i32
  }
  func.func @transform_1(%arg0: i32, %arg1: i32) -> (i32, i32) {
    %c0_i32 = arith.constant 0 : i32
    %c0_i32_0 = arith.constant 0 : i32
    %c0_i32_1 = arith.constant 0 : i32
    return %c0_i32, %c0_i32_0 : i32, i32
  }
  func.func @transform_2(%arg0: i32, %arg1: i32) -> (i32, i32) {
    %c0_i32 = arith.constant 0 : i32
    %c0_i32_0 = arith.constant 0 : i32
    %c0_i32_1 = arith.constant 0 : i32
    return %c0_i32, %c0_i32_0 : i32, i32
  }
  func.func @transform_3(%arg0: i32, %arg1: i32) -> (i32, i32) {
    %c0_i32 = arith.constant 0 : i32
    %c0_i32_0 = arith.constant 0 : i32
    %c0_i32_1 = arith.constant 0 : i32
    return %c0_i32, %c0_i32_0 : i32, i32
  }
  func.func @transform_4(%arg0: i32, %arg1: i32) -> (i32, i32) {
    %c0_i32 = arith.constant 0 : i32
    %c0_i32_0 = arith.constant 0 : i32
    return %arg0, %c0_i32 : i32, i32
  }
}

</mosaic_0001>

<bundles_post_ra>
// kernel: tpu_custom_call.1
= control target key start
LH: loop header
LB: loop body
LE: loop exit
PB: predicated region body
PF: predicated region fallthrough
CT: control target
= control target key end

     0   :  { %9 = vsyncpa [#allocation4], 0  ;;  %s797_s0 = inlined_call_operand.hbm [shape: f32[2,8,32], index: 0, kind: input, shape index: {}]   ;;  %s798_s1 = inlined_call_operand.hbm [shape: f32[32,32], index: 1, kind: input, shape index: {}]   ;;  %s799_s2 = inlined_call_operand.hbm [shape: f32[32,128], index: 2, kind: input, shape index: {}]   ;;  %s800_s3 = inlined_call_operand.vmem [shape: f32[1,128], index: 3, kind: input, shape index: {}]   ;;  %s801_s4 = inlined_call_operand.hbm [shape: f32[2,128], index: 4, kind: output, shape index: {}]  }
   0x1   :  { %10 = vsyncpa [#allocation7], 0 }
   0x2   :  { %11 = vsyncpa [#allocation5], 0  ;;  %s700_s15 = smov [#allocation6]   ;;  %s701_s17 = smov [#allocation3]  }
   0x3   :  { %s29_s16 = sshll.u32 %s700_s15, 4  ;;  %s17_s18 = sshll.u32 %s701_s17, 4  ;;  %s30_s16 = int_to_ptr.vmem [resolvable:$true] %s29_s16  ;;  %s18_s18 = int_to_ptr.vmem [resolvable:$true] %s17_s18 }
   0x4   :  { %s622_s19 = scalar_lea.vmem %s30_s16, 512  ;;  %p627_p1 = scmp.lt.s32.totalorder %s30_s16, %s30_s16 }
   0x5   :  { %p623_p0 = scmp.ne.s32.totalorder %s30_s16, %s622_s19  ;;  %p628_p2 = scmp.lt.s32.totalorder %s622_s19, %s622_s19 }
   0x7   :  { %p629_p3 = por %p628_p2, %p627_p1 }
   0x9   :  { %p630_p4 = pnand %p629_p3, %p623_p0 }
   0xb   :  { %633 = shalt.err (!%p630_p4)
}
   0xc   :  { %s702_s20 = smov 128   ;;  %s703_s21 = smov 8  }
   0xd   :  { %35 = dma.hbm_to_vmem [thread:$0]  %s798_s1, 512, %s30_s16, [#allocation7], %s702_s20, %s702_s20, %s703_s21  }
   0xe   :  { %s642_s24 = scalar_lea.vmem %s18_s18, 256  ;;  %p647_p6 = scmp.lt.s32.totalorder %s18_s18, %s18_s18 }
   0xf   :  { %p643_p5 = scmp.ne.s32.totalorder %s18_s18, %s642_s24  ;;  %p648_p7 = scmp.lt.s32.totalorder %s642_s24, %s642_s24 }
  0x11   :  { %p649_p8 = por %p648_p7, %p647_p6 }
  0x13   :  { %p650_p9 = pnand %p649_p8, %p643_p5 }
  0x15   :  { %653 = shalt.err (!%p650_p9)
}
  0x16   :  { %23 = dma.hbm_to_vmem [thread:$0]  %s797_s0, 256, %s18_s18, [#allocation4], %s702_s20, %s702_s20, %s703_s21  }
  0x17   :  { %s704_s27 = smov [#allocation8]  }
  0x18   :  { %s41_s28 = sshll.u32 %s704_s27, 4  ;;  %s42_s28 = int_to_ptr.vmem [resolvable:$true] %s41_s28 }
  0x19   :  { %s662_s29 = scalar_lea.vmem %s42_s28, 512  ;;  %p667_p11 = scmp.lt.s32.totalorder %s42_s28, %s42_s28 }
  0x1a   :  { %p663_p10 = scmp.ne.s32.totalorder %s42_s28, %s662_s29  ;;  %p668_p12 = scmp.lt.s32.totalorder %s662_s29, %s662_s29 }
  0x1c   :  { %p669_p13 = por %p668_p12, %p667_p11 }
  0x1e   :  { %p670_p0 = pnand %p669_p13, %p663_p10 }
  0x20   :  { %673 = shalt.err (!%p670_p0)
}
  0x21   :  { %47 = dma.hbm_to_vmem [thread:$0]  %s799_s2, 512, %s42_s28, [#allocation7], %s702_s20, %s702_s20, %s703_s21  }
  0x22   :  { %694 = dma.done.wait [#allocation4], 256  }
  0x23   :  { %695 = vsyncadd [#allocation4], 4294967040 }
  0x24   :  { %696 = dma.done.wait [#allocation7], 1024  }
  0x25   :  { %697 = vsyncadd [#allocation7], 4294966272  ;;  %vm70_vm0 = vcmask 261120   ;;  %v69_v0 = vld [vmem:[#allocation6 + $0x18] sm:$0xff]  ;;  %v68_v1 = vld [vmem:[#allocation6 + $0x10] sm:$0xff]  ;;  %s705_s0 = smov 112   ;;  %v177_v11 = vlaneseq }
  0x26   :  { %576 = vmatprep.subr.mxu0 %v69_v0  ;;  %v64_v2 = vld [vmem:[#allocation3] sm:$0xff]  ;;  %v67_v3 = vld [vmem:[#allocation6 + $0x8] sm:$0xff]  ;;  %v66_v4 = vld [vmem:[#allocation6] sm:$0xff]  ;;  %s706_s2 = smov 120   ;;  %v707_v8 = vmov 0.0   ;;  %s708_s5 = smov 104  }
  0x27   :  { %577 = vmatpush3.msra.mxu0 %v69_v0  ;;  %584 = vmatprep.mubr.msk.f32.mxu0 %vm70_vm0, %v64_v2  ;;  %v65_v5 = vld [vmem:[#allocation3 + $0x8] sm:$0xff]  ;;  %63 = vst [vmem:[#allocation2] sm:$0x3] %v707_v8  ;;  %v709_v9 = vmov 1983009808   ;;  %v753_v17 = vshrl.u32 %v177_v11, 7 }
  0x28   :  { %578 = vmatprep.subr.mxu0 %v68_v1  ;;  %587 = vmatprep.subr.mxu1 %v707_v8  ;;  %v175_v10 = vunpack.c.l.s4 %v709_v9  ;;  %v710_v14 = vmov 1934713408   ;;  %vm308_vm1 = vcmask 60416   ;;  %vm712_vm2 = vmmov 0   ;;  %s713_s8 = smov [#allocation9]  }
  0x29   :  { %579 = vmatpush3.msra.mxu0 %v68_v1  ;;  %v207_v15 = vunpack.c.l.s4 %v710_v14  ;;  %595 = vmatprep.mubr.msk.f32.mxu1 %vm712_vm2, %v707_v8  ;;  %vm421_vm3 = vcmask 130112   ;;  %vm428_vm4 = vcmask 195712   ;;  %vm435_vm5 = vcmask 261312   ;;  %s551_s9 = sshll.u32 %s713_s8, 4  ;;  %s552_s9 = int_to_ptr.vmem [resolvable:$true] %s551_s9 }
  0x2a   :  { %580 = vmatprep.subr.mxu0 %v67_v3  ;;  %v176_v16 = vunpack.c.0.s8 %v175_v10  ;;  %vm456_vm6 = vcmask 1041409   ;;  %s674_s10 = scalar_lea.vmem %s552_s9, 32  ;;  %p679_p2 = scmp.lt.s32.totalorder %s552_s9, %s552_s9 }
  0x2b   :  { %581 = vmatpush3.msra.mxu0 %v67_v3  ;;  %v208_v20 = vunpack.c.0.s8 %v207_v15  ;;  %p675_p1 = scmp.ne.s32.totalorder %s552_s9, %s674_s10  ;;  %p680_p3 = scmp.lt.s32.totalorder %s674_s10, %s674_s10 }
  0x2c   :  { %582 = vmatprep.subr.mxu0 %v66_v4  ;;  %v179_v21 = vsub.s32 %v176_v16, %v753_v17 }
  0x2d   :  { %583 = vmatpush3.msra.mxu0 %v66_v4  ;;  %v211_v30 = vsub.s32 %v208_v20, %v753_v17  ;;  %v711_v20 = vmov 0   ;;  %p681_p4 = por %p680_p3, %p679_p2 }
  0x2e   :  { %585 = vmatmul.mubr.msk.f32.vlgmr.msra.gmra.mxu0 %vm70_vm0, %v65_v5  ;;  %613 = vset.pattern.permute.xlu0 %v711_v20 }
  0x2f   :  { %612 = vset.pattern.permute.xlu1 %v711_v20  ;;  %v564_v20 = vld [vmem:[%s800_s3] ss:$0 sm:$0xff]  ;;  %p682_p5 = pnand %p681_p4, %p675_p1 }
  0xee   :  { %v586_v6 = vpop.f32.mrf.mxu0 }
  0xef   :  { %162 = vrot.lane.b32.xlu1 %v586_v6, %s705_s0  ;;  %156 = vrot.lane.b32.xlu0 %v586_v6, %s706_s2 }
  0xf0   :  { %v143_v7 = vpop.f32.mrf.mxu0 }
  0xf3   :  { %160 = vrot.lane.b32.xlu1 %v143_v7, %s705_s0  ;;  %154 = vrot.lane.b32.xlu0 %v143_v7, %s706_s2 }
  0xf7   :  { %168 = vrot.lane.b32.xlu1 %v586_v6, %s708_s5  ;;  %166 = vrot.lane.b32.xlu0 %v143_v7, %s708_s5 }
 0x161   :  { %v163_v12 = vpop.permute.xlu1 %162  ;;  %v157_v13 = vpop.permute.xlu0 %156 }
 0x162   :  { %v240_v22 = vcombine.low %v586_v6, %v163_v12  ;;  %v241_v29 = vcombine.high %v586_v6, %v163_v12 }
 0x164   :  { %v248_v31 = vrot.slane %v240_v22, %v179_v21  ;;  %v255_v41 = vrot.slane %v241_v29, %v179_v21 }
 0x165   :  { %v161_v18 = vpop.permute.xlu1 %160  ;;  %v155_v19 = vpop.permute.xlu0 %154 }
 0x166   :  { %v172_v23 = vcombine.low %v143_v7, %v161_v18  ;;  %v173_v42 = vcombine.high %v143_v7, %v161_v18 }
 0x168   :  { %v180_v32 = vrot.slane %v172_v23, %v179_v21  ;;  %v187_v51 = vrot.slane %v173_v42, %v179_v21  ;;  %v360_v42 = vld [vmem:[#allocation8 + $0x18] sm:$0xff] }
 0x169   :  { %v169_v24 = vpop.permute.xlu1 %168  ;;  %v167_v25 = vpop.permute.xlu0 %166  ;;  %588 = vmatpush3.msra.mxu1 %v360_v42 }
 0x16a   :  { %v256_v26 = vcombine.low %v157_v13, %v169_v24  ;;  %v257_v27 = vcombine.high %v157_v13, %v169_v24  ;;  %v188_v28 = vcombine.low %v155_v19, %v167_v25  ;;  %v189_v36 = vcombine.high %v155_v19, %v167_v25  ;;  %589 = vmatprep.subr.mxu1 %v707_v8 }
 0x16c   :  { %v264_v33 = vrot.slane %v256_v26, %v179_v21  ;;  %v196_v34 = vrot.slane %v188_v28, %v179_v21  ;;  %v271_v35 = vrot.slane %v257_v27, %v179_v21  ;;  %v203_v45 = vrot.slane %v189_v36, %v179_v21 }
 0x16e   :  { %v272_v37 = vcombine.low %v248_v31, %v264_v33  ;;  %v204_v38 = vcombine.low %v180_v32, %v196_v34  ;;  %v273_v39 = vcombine.high %v248_v31, %v264_v33  ;;  %v205_v40 = vcombine.high %v180_v32, %v196_v34 }
 0x16f   :  { %v288_v46 = vcombine.low %v255_v41, %v271_v35  ;;  %v220_v52 = vcombine.low %v187_v51, %v203_v45  ;;  %v221_v57 = vcombine.high %v187_v51, %v203_v45  ;;  %v289_v2 = vcombine.high %v255_v41, %v271_v35 }
 0x170   :  { %v280_v43 = vrot.slane %v272_v37, %v211_v30  ;;  %v212_v44 = vrot.slane %v204_v38, %v211_v30  ;;  %v287_v49 = vrot.slane %v273_v39, %v211_v30  ;;  %v219_v50 = vrot.slane %v205_v40, %v211_v30 }
 0x171   :  { %v296_v55 = vrot.slane %v288_v46, %v211_v30  ;;  %v228_v60 = vrot.slane %v220_v52, %v211_v30  ;;  %v235_v0 = vrot.slane %v221_v57, %v211_v30  ;;  %v303_v12 = vrot.slane %v289_v2, %v211_v30 }
 0x172   :  { %v333_v47 = vsel %vm308_vm1, %v280_v43, 0.0  ;;  %v309_v48 = vsel %vm308_vm1, %v212_v44, 0.0  ;;  %v339_v53 = vsel %vm308_vm1, %v287_v49, 0.0  ;;  %v315_v54 = vsel %vm308_vm1, %v219_v50, 0.0 }
 0x173   :  { %334 = vadd.xlane.f32.xlu1 %v333_v47  ;;  %310 = vadd.xlane.f32.xlu0 %v309_v48  ;;  %v304_v56 = vcombine.high %v280_v43, %v707_v8  ;;  %v345_v58 = vsel %vm308_vm1, %v296_v55, 0.0  ;;  %v305_v61 = vcombine.high %v287_v49, %v707_v8  ;;  %v321_v62 = vsel %vm308_vm1, %v228_v60, 0.0  ;;  %v359_v43 = vld [vmem:[#allocation8 + $0x10] sm:$0xff]  ;;  %v358_v47 = vld [vmem:[#allocation8 + $0x8] sm:$0xff]  ;;  %v357_v48 = vld [vmem:[#allocation8] sm:$0xff] }
 0x174   :  { %v306_v1 = vcombine.high %v296_v55, %v707_v8  ;;  %v327_v3 = vsel %vm308_vm1, %v235_v0, 0.0  ;;  %v237_v5 = vcombine.high %v219_v50, %v707_v8  ;;  %v236_v6 = vcombine.high %v212_v44, %v707_v8  ;;  %590 = vmatpush3.msra.mxu1 %v359_v43 }
 0x175   :  { %v336_v59 = vsel %vm308_vm1, %v304_v56, 0.0  ;;  %v342_v63 = vsel %vm308_vm1, %v305_v61, 0.0  ;;  %v238_v10 = vcombine.high %v228_v60, %v707_v8  ;;  %v351_v14 = vsel %vm308_vm1, %v303_v12, 0.0  ;;  %591 = vmatprep.subr.mxu1 %v707_v8 }
 0x176   :  { %v348_v4 = vsel %vm308_vm1, %v306_v1, 0.0  ;;  %v318_v7 = vsel %vm308_vm1, %v237_v5, 0.0  ;;  %v312_v9 = vsel %vm308_vm1, %v236_v6, 0.0  ;;  %v239_v15 = vcombine.high %v235_v0, %v707_v8  ;;  %592 = vmatpush3.msra.mxu1 %v358_v47 }
 0x177   :  { %340 = vadd.xlane.f32.xlu1 %v339_v53  ;;  %316 = vadd.xlane.f32.xlu0 %v315_v54  ;;  %v324_v13 = vsel %vm308_vm1, %v238_v10, 0.0  ;;  %v307_v18 = vcombine.high %v303_v12, %v707_v8  ;;  %v411_v52 = vand.u32 127, %v177_v11 }
 0x178   :  { %v330_v16 = vsel %vm308_vm1, %v239_v15, 0.0  ;;  %593 = vmatprep.subr.mxu1 %v707_v8  ;;  %v361_v15 = vld [vmem:[#allocation2] sm:$0x3] }
 0x179   :  { %v354_v19 = vsel %vm308_vm1, %v307_v18, 0.0  ;;  %594 = vmatpush3.msra.mxu1 %v357_v48  ;;  %v416_v54 = vadd.s32 4294967288, %v411_v52  ;;  %v423_v55 = vadd.s32 4294967280, %v411_v52  ;;  %v430_v56 = vadd.s32 4294967272, %v411_v52 }
 0x17b   :  { %346 = vadd.xlane.f32.xlu1 %v345_v58  ;;  %337 = vadd.xlane.f32.xlu0 %v336_v59  ;;  %v419_v58 = vsub.s32 %v416_v54, %v753_v17  ;;  %v414_v59 = vsub.s32 %v411_v52, %v753_v17  ;;  %v426_v61 = vsub.s32 %v423_v55, %v753_v17 }
 0x17c   :  { %v433_v8 = vsub.s32 %v430_v56, %v753_v17 }
 0x17f   :  { %322 = vadd.xlane.f32.xlu1 %v321_v62  ;;  %343 = vadd.xlane.f32.xlu0 %v342_v63 }
 0x183   :  { %328 = vadd.xlane.f32.xlu1 %v327_v3  ;;  %349 = vadd.xlane.f32.xlu0 %v348_v4 }
 0x187   :  { %319 = vadd.xlane.f32.xlu0 %v318_v7  ;;  %313 = vadd.xlane.f32.xlu1 %v312_v9 }
 0x18b   :  { %325 = vadd.xlane.f32.xlu0 %v324_v13  ;;  %352 = vadd.xlane.f32.xlu1 %v351_v14 }
 0x18f   :  { %331 = vadd.xlane.f32.xlu0 %v330_v16 }
 0x193   :  { %355 = vadd.xlane.f32.xlu0 %v354_v19 }
 0x1fc   :  { %v335_v21 = vpop.xlane.xlu1 %334  ;;  %v311_v22 = vpop.xlane.xlu0 %310 }
 0x200   :  { %v341_v23 = vpop.xlane.xlu1 %340  ;;  %v317_v24 = vpop.xlane.xlu0 %316 }
 0x204   :  { %v347_v25 = vpop.xlane.xlu1 %346  ;;  %v338_v26 = vpop.xlane.xlu0 %337 }
 0x205   :  { %v382_v35 = vcombine.low %v335_v21, %v338_v26 }
 0x208   :  { %v323_v27 = vpop.xlane.xlu1 %322  ;;  %v344_v28 = vpop.xlane.xlu0 %343 }
 0x209   :  { %v383_v36 = vcombine.low %v341_v23, %v344_v28 }
 0x20c   :  { %v329_v29 = vpop.xlane.xlu1 %328  ;;  %v350_v30 = vpop.xlane.xlu0 %349 }
 0x20d   :  { %v384_v38 = vcombine.low %v347_v25, %v350_v30 }
 0x210   :  { %v320_v31 = vpop.xlane.xlu0 %319  ;;  %v314_v32 = vpop.xlane.xlu1 %313 }
 0x211   :  { %v379_v33 = vcombine.low %v317_v24, %v320_v31  ;;  %v378_v34 = vcombine.low %v311_v22, %v314_v32 }
 0x213   :  { %390 = vperm.xlu0 %613, %v379_v33   ;;  %387 = vperm.xlu1 %612, %v378_v34  }
 0x214   :  { %v326_v37 = vpop.xlane.xlu0 %325  ;;  %v353_v45 = vpop.xlane.xlu1 %352 }
 0x215   :  { %v380_v40 = vcombine.low %v323_v27, %v326_v37 }
 0x217   :  { %399 = vperm.xlu1 %612, %v382_v35  }
 0x218   :  { %v332_v39 = vpop.xlane.xlu0 %331 }
 0x219   :  { %v381_v41 = vcombine.low %v329_v29, %v332_v39 }
 0x21b   :  { %402 = vperm.xlu1 %612, %v383_v36  }
 0x21c   :  { %v356_v44 = vpop.xlane.xlu0 %355 }
 0x21d   :  { %v385_v46 = vcombine.low %v353_v45, %v356_v44 }
 0x21f   :  { %405 = vperm.xlu1 %612, %v384_v38  }
 0x223   :  { %393 = vperm.xlu1 %612, %v380_v40  }
 0x227   :  { %396 = vperm.xlu1 %612, %v381_v41  }
 0x22b   :  { %408 = vperm.xlu1 %612, %v385_v46  }
 0x28e   :  { %v388_v49 = vpop.permute.xlu1 %387  ;;  %v391_v60 = vpop.permute.xlu0 %390 }
 0x28f   :  { %v420_v63 = vrot.slane %v391_v60, %v419_v58  ;;  %v415_v0 = vrot.slane %v388_v49, %v414_v59 }
 0x291   :  { %v422_v6 = vsel %vm421_vm3, %v420_v63, %v415_v0 }
 0x292   :  { %v400_v50 = vpop.permute.xlu1 %399 }
 0x293   :  { %v440_v3 = vrot.slane %v400_v50, %v414_v59 }
 0x296   :  { %v403_v51 = vpop.permute.xlu1 %402 }
 0x297   :  { %v444_v1 = vrot.slane %v403_v51, %v419_v58 }
 0x299   :  { %v445_v7 = vsel %vm421_vm3, %v444_v1, %v440_v3 }
 0x29a   :  { %v406_v53 = vpop.permute.xlu1 %405 }
 0x29b   :  { %v449_v11 = vrot.slane %v406_v53, %v426_v61 }
 0x29d   :  { %v450_v10 = vsel %vm428_vm4, %v449_v11, %v445_v7 }
 0x29e   :  { %v394_v57 = vpop.permute.xlu1 %393 }
 0x29f   :  { %v427_v2 = vrot.slane %v394_v57, %v426_v61 }
 0x2a1   :  { %v429_v12 = vsel %vm428_vm4, %v427_v2, %v422_v6 }
 0x2a2   :  { %v397_v62 = vpop.permute.xlu1 %396 }
 0x2a3   :  { %v434_v4 = vrot.slane %v397_v62, %v433_v8 }
 0x2a5   :  { %v436_v13 = vsel %vm435_vm5, %v434_v4, %v429_v12 }
 0x2a6   :  { %v409_v5 = vpop.permute.xlu1 %408 }
 0x2a7   :  { %v454_v9 = vrot.slane %v409_v5, %v433_v8 }
 0x2a9   :  { %v455_v17 = vsel %vm435_vm5, %v454_v9, %v450_v10 }
 0x2aa   :  { %v457_v14 = vsel %vm456_vm6, %v455_v17, %v436_v13 }
 0x2ab   :  { %596 = vmatmul.mubr.msk.f32.vlgmr.msra.gmra.mxu1 %vm70_vm0, %v457_v14 }
 0x36b   :  { %v526_v16 = vpop.f32.mrf.mxu1 }
 0x36c   :  { %v530_v18 = vadd.f32 %v526_v16, %v361_v15 }
 0x36d   :  { %v597_v19 = vpop.f32.mrf.mxu1 }
 0x36e   :  { %531 = vst [vmem:[#allocation2] sm:$0x3] %v530_v18 }
 0x375   :  { %v535_v21 = vld [vmem:[#allocation2] sm:$0x3] }
 0x376   :  { %v543_v22 = vadd.f32 %v564_v20, %v535_v21 }
 0x378   :  { %544 = vst [vmem:[#allocation9] sm:$0x3] %v543_v22 }
 0x379   :  { %685 = shalt.err (!%p682_p5)
}
 0x37a   :  { %554 = dma.vmem_to_hbm [thread:$0]  %s552_s9, 32, %s801_s4, [#allocation5]  }
 0x37b   :  { %698 = dma.done.wait [#allocation5], 32  }
 0x37c   :  { %699 = vsyncadd [#allocation5], 4294967264 }
 0x37d   :  { %558 = vsyncpa [#allocation4], 1 }
 0x37e   :  { %559 = vsyncpa [#allocation7], 1 }
 0x37f   :  { %560 = vsyncpa [#allocation5], 1 }

</bundles_post_ra>
